<compile_context>
chip_gen: v6e
topology: v6e:2x2x1
jax: 0.10.0
libtpu: 0.0.40
codegen_flags: <defaults>
</compile_context>

<pallas_src>
import functools
import math

import jax
import jax.numpy as jnp
from jax.experimental import pallas as pl
from jax.experimental.pallas import tpu as pltpu


def _cdiv(a, b):
    return -(-a // b)


def _round_up(a, m):
    return _cdiv(a, m) * m


def cross_attn_kernel(q_ref, k_ref, v_ref,
                      wq_ref, wk_ref, wv_ref,
                      wp_ref, bp_ref,
                      o_ref, *, nq, nk):
    inner = wq_ref.shape[1]
    bt = q_ref.shape[0] // nq
    cdt = q_ref.dtype  # MXU operand dtype (bf16 by default), f32 accumulation.

    # Projections as flat 2-D matmuls over the whole batch-tile slab (the
    # inputs arrive pre-flattened, so no in-kernel input reshape).  The SDPA
    # scale is already folded into wq by the wrapper.
    qp = jnp.dot(q_ref[...], wq_ref[...], preferred_element_type=jnp.float32)
    kp = jnp.dot(k_ref[...], wk_ref[...], preferred_element_type=jnp.float32)
    vp = jnp.dot(v_ref[...], wv_ref[...], preferred_element_type=jnp.float32)

    # Per-batch attention core stays f32 (it is <5% of the flops at these
    # shapes), so the leading-dim split below lands on f32 (8,128) tiles and
    # avoids bf16 (16,128) sublane-packing relayouts.
    qp = qp.reshape(bt, nq, inner)
    kp = kp.reshape(bt, nk, inner)
    vp = vp.reshape(bt, nk, inner)

    # Scores: contract last dims directly -- no kp transpose.
    s = jnp.einsum('bqc,bkc->bqk', qp, kp, preferred_element_type=jnp.float32)
    s = s - jnp.max(s, axis=-1, keepdims=True)
    p = jnp.exp(s)
    inv = pl.reciprocal(jnp.sum(p, axis=-1, keepdims=True), approx=True)
    ctx = jnp.einsum('bqk,bkc->bqc', p * inv, vp,
                     preferred_element_type=jnp.float32)

    # Output projection (with bias) on the flattened slab; the store is the
    # block itself (no output reshape in-kernel).
    out = jnp.dot(ctx.reshape(bt * nq, inner).astype(cdt), wp_ref[...],
                  preferred_element_type=jnp.float32)
    o_ref[...] = (out + bp_ref[...]).astype(o_ref.dtype)


def _device_info():
    """(two_tensorcores, per-core VMEM cap to use for the scoped limit)."""
    try:
        kind = (jax.devices()[0].device_kind or "").lower()
    except Exception:
        kind = ""
    two_tc = ("7x" in kind) or ("v7" in kind)
    if two_tc:
        vmem_cap = 48 << 20   # v7x: 64 MiB physical per TensorCore, keep headroom
    elif any(t in kind for t in ("v5 lite", "v5e", "v5p", "v5", "v6", "v4")):
        vmem_cap = 96 << 20   # 128 MiB physical VMEM
    else:
        vmem_cap = 32 << 20   # unknown chip: stay at the default scoped limit
    return two_tc, vmem_cap


def _step_vmem_bytes(bt, nq, nk, dim, inner, act_bytes, out_bytes):
    """Per-grid-step VMEM estimate: double-buffered I/O blocks + f32 temps +
    resident weights."""
    io = 2 * bt * ((nq + 2 * nk) * dim * act_bytes + nq * dim * out_bytes)
    interm = 4 * bt * ((nq + 2 * nk) * inner + 2 * nq * nk
                       + nq * inner + nq * dim)
    w = (3 * dim * inner + inner * dim) * act_bytes + dim * 4
    return io + interm + w


def _pick_tiling(B, nq, nk, dim, inner, act_bytes, out_bytes, two_tc,
                 vmem_budget_bytes, target_rows=4096):
    """Pick (batch_tile, grid_steps).  On 1-TC chips: the single largest
    VMEM-fitting tile (fewest grid steps).  On 2-TC chips (v7x): an even
    number of >=2 steps so the parallel batch axis splits across cores."""
    # Sublane alignment of the flattened 2-D blocks (bf16 packs 16 rows/vreg).
    sub = 16 if act_bytes < 4 else 8
    req = 1
    for n in (nq, nk):
        r = sub // math.gcd(n, sub)
        req = req * r // math.gcd(req, r)

    bt = max(1, min(B, max(1, target_rows // max(nq, 1))))
    while bt > req and _step_vmem_bytes(bt, nq, nk, dim, inner,
                                        act_bytes, out_bytes) > vmem_budget_bytes:
        bt = max(req, bt // 2)
    bt = min(_round_up(bt, req), _round_up(B, req))

    if two_tc and B > req:
        steps = max(2, _cdiv(B, bt))
        if steps % 2:
            steps += 1
        bt = min(bt, max(req, _round_up(_cdiv(B, steps), req)))
    steps = _cdiv(B, bt)
    return bt, steps


def _cost_estimate(B, nq, nk, dim, inner, act_dtype, out_dtype):
    flops = 2 * B * (nq * dim * inner          # q projection
                     + 2 * nk * dim * inner    # k, v projections
                     + 2 * nq * nk * inner     # scores + p @ v
                     + nq * inner * dim)       # output projection
    transcendentals = B * nq * (nk + 1)        # exp + reciprocal
    ab = jnp.dtype(act_dtype).itemsize
    ob = jnp.dtype(out_dtype).itemsize
    bytes_accessed = (B * (nq + 2 * nk) * dim * ab            # q, k, v
                      + (3 * dim * inner + inner * dim) * ab  # weights
                      + dim * 4                               # bias (f32)
                      + B * nq * dim * ob)                    # output
    return pl.CostEstimate(flops=flops, transcendentals=transcendentals,
                           bytes_accessed=bytes_accessed)


def one_way_cross_attention(q, k, v, params, *, compute_dtype=jnp.bfloat16,
                            batch_tile=None):
    """q: (B, Nq, dim); k, v: (B, Nk, dim). Returns (B, Nq, dim) in q.dtype.

    params = (wq, wk, wv, wp, bp): wq/wk/wv (dim, inner), wp (inner, dim),
    bp (1, dim) -- Linear weights pre-transposed to (in, out)."""
    B, Nq, dim = q.shape
    _, Nk, _ = k.shape
    wq, wk, wv, wp, bp = params
    inner = wq.shape[1]
    scale = 1.0 / math.sqrt(inner)  # SDPA default scale on the un-split tensors

    two_tc, vmem_cap = _device_info()
    act_bytes = jnp.dtype(compute_dtype).itemsize
    out_bytes = jnp.dtype(q.dtype).itemsize

    if batch_tile is not None:
        bt = batch_tile
        steps = _cdiv(B, bt)
    else:
        bt, steps = _pick_tiling(B, Nq, Nk, dim, inner, act_bytes, out_bytes,
                                 two_tc, vmem_cap // 2)
    B_pad = steps * bt

    vmem_limit = int(min(vmem_cap,
                         max(32 << 20,
                             2 * _step_vmem_bytes(bt, Nq, Nk, dim, inner,
                                                  act_bytes, out_bytes))))

    # bf16 MXU operands (f32 accumulation in-kernel); bias stays f32.  The
    # attention scale is folded into wq once here (tiny (dim, inner) tensor).
    qc, kc, vc = (x.astype(compute_dtype) for x in (q, k, v))
    if B_pad != B:
        pad = B_pad - B
        qc = jnp.pad(qc, ((0, pad), (0, 0), (0, 0)))
        kc = jnp.pad(kc, ((0, pad), (0, 0), (0, 0)))
        vc = jnp.pad(vc, ((0, pad), (0, 0), (0, 0)))
    # Flatten to 2-D slabs (free, contiguous leading-dim reshape in HBM).
    q2 = qc.reshape(B_pad * Nq, dim)
    k2 = kc.reshape(B_pad * Nk, dim)
    v2 = vc.reshape(B_pad * Nk, dim)

    wqc = (wq * scale).astype(compute_dtype)
    wkc = wk.astype(compute_dtype)
    wvc = wv.astype(compute_dtype)
    wpc = wp.astype(compute_dtype)
    bpf = bp.astype(jnp.float32)

    kernel = functools.partial(cross_attn_kernel, nq=Nq, nk=Nk)

    grid_spec = pltpu.PrefetchScalarGridSpec(
        num_scalar_prefetch=0,
        grid=(steps,),
        in_specs=[
            pl.BlockSpec((bt * Nq, dim), lambda b: (b, 0)),
            pl.BlockSpec((bt * Nk, dim), lambda b: (b, 0)),
            pl.BlockSpec((bt * Nk, dim), lambda b: (b, 0)),
            # Weights/bias use a constant block index -> stay VMEM-resident.
            pl.BlockSpec((dim, inner), lambda b: (0, 0)),
            pl.BlockSpec((dim, inner), lambda b: (0, 0)),
            pl.BlockSpec((dim, inner), lambda b: (0, 0)),
            pl.BlockSpec((inner, dim), lambda b: (0, 0)),
            pl.BlockSpec((1, dim), lambda b: (0, 0)),
        ],
        out_specs=pl.BlockSpec((bt * Nq, dim), lambda b: (b, 0)),
    )

    out2 = pl.pallas_call(
        kernel,
        out_shape=jax.ShapeDtypeStruct((B_pad * Nq, dim), q.dtype),
        grid_spec=grid_spec,
        compiler_params=pltpu.CompilerParams(
            dimension_semantics=("parallel",),
            vmem_limit_bytes=vmem_limit),
        cost_estimate=_cost_estimate(B_pad, Nq, Nk, dim, inner,
                                     compute_dtype, q.dtype),
    )(q2, k2, v2, wqc, wkc, wvc, wpc, bpf)

    out = out2.reshape(B_pad, Nq, dim)
    return out[:B] if B_pad != B else out


def reference(q, k, v, params):
    wq, wk, wv, wp, bp = params
    inner_dim = wq.shape[1]
    qp = q @ wq
    kp = k @ wk
    vp = v @ wv
    s = jnp.einsum("bqc,bkc->bqk", qp, kp) / math.sqrt(inner_dim)
    p = jax.nn.softmax(s, axis=-1)
    ctx = jnp.einsum("bqk,bkc->bqc", p, vp)
    return ctx @ wp + bp[0]


if __name__ == "__main__":
    # Module hyperparameters (small, consistent with the nn.Module defaults).
    dim = 32
    num_heads = 8
    downsample_factor = 1
    inner_dim = dim // downsample_factor

    B, Nq, Nk = 4, 8, 8

    key = jax.random.PRNGKey(0)
    kq, kk, kv_, kwq, kwk, kwv, kwp, kbp = jax.random.split(key, 8)

    q = jax.random.normal(kq, (B, Nq, dim), dtype=jnp.float32)
    k = jax.random.normal(kk, (B, Nk, dim), dtype=jnp.float32)
    v = jax.random.normal(kv_, (B, Nk, dim), dtype=jnp.float32)

    # Linear weights stored pre-transposed: (in_features, out_features).
    wq = jax.random.normal(kwq, (dim, inner_dim), dtype=jnp.float32) * 0.05
    wk = jax.random.normal(kwk, (dim, inner_dim), dtype=jnp.float32) * 0.05
    wv = jax.random.normal(kwv, (dim, inner_dim), dtype=jnp.float32) * 0.05
    wp = jax.random.normal(kwp, (inner_dim, dim), dtype=jnp.float32) * 0.05
    bp = jax.random.normal(kbp, (1, dim), dtype=jnp.float32) * 0.05
    params = (wq, wk, wv, wp, bp)

    ref = reference(q, k, v, params)

    # f32 compute path (approx-reciprocal is the only deviation): tight check.
    out_f32 = jax.block_until_ready(
        one_way_cross_attention(q, k, v, params, compute_dtype=jnp.float32))
    assert out_f32.shape == (B, Nq, dim)
    assert jnp.allclose(out_f32, ref, atol=2e-3, rtol=1e-2), "f32 mismatch vs reference"

    # Default bf16 MXU path with the auto-picked (generation-aware) tiling.
    out_bf16 = jax.block_until_ready(one_way_cross_attention(q, k, v, params))
    assert out_bf16.shape == (B, Nq, dim)
    assert jnp.allclose(out_bf16, ref, atol=5e-3, rtol=5e-2), "bf16 mismatch vs reference"

    # Explicit multi-step grid (exercises the batch-tiled path on 1-TC chips).
    out_tiled = jax.block_until_ready(
        one_way_cross_attention(q, k, v, params, batch_tile=2))
    assert out_tiled.shape == (B, Nq, dim)
    assert jnp.allclose(out_tiled, ref, atol=5e-3, rtol=5e-2), "tiled mismatch vs reference"

    print("KERNEL_OK")
</pallas_src>

<mosaic_0001>
module attributes {stable_mosaic.version = 11 : i64} {
  func.func @cross_attn_kernel(%arg0: i32, %arg1: memref<32x32xf32, #tpu.memory_space<vmem>>, %arg2: memref<32x32xf32, #tpu.memory_space<vmem>>, %arg3: memref<32x32xf32, #tpu.memory_space<vmem>>, %arg4: memref<32x32xf32, #tpu.memory_space<vmem>>, %arg5: memref<32x32xf32, #tpu.memory_space<vmem>>, %arg6: memref<32x32xf32, #tpu.memory_space<vmem>>, %arg7: memref<32x32xf32, #tpu.memory_space<vmem>>, %arg8: memref<1x32xf32, #tpu.memory_space<vmem>>, %arg9: memref<32x32xf32, #tpu.memory_space<vmem>>) attributes {dimension_semantics = [#tpu.dimension_semantics<parallel>], iteration_bounds = array<i64: 1>, scalar_prefetch = 0 : i64, scratch_operands = 0 : i64, tpu.core_type = #tpu.core_type<tc>, window_params = [{transform_indices = @transform_0, window_bounds = array<i64: 32, 32>}, {transform_indices = @transform_1, window_bounds = array<i64: 32, 32>}, {transform_indices = @transform_2, window_bounds = array<i64: 32, 32>}, {pipeline_mode = #tpu.pipeline_mode<synchronous>, transform_indices = @transform_3, window_bounds = array<i64: 32, 32>}, {pipeline_mode = #tpu.pipeline_mode<synchronous>, transform_indices = @transform_4, window_bounds = array<i64: 32, 32>}, {pipeline_mode = #tpu.pipeline_mode<synchronous>, transform_indices = @transform_5, window_bounds = array<i64: 32, 32>}, {pipeline_mode = #tpu.pipeline_mode<synchronous>, transform_indices = @transform_6, window_bounds = array<i64: 32, 32>}, {pipeline_mode = #tpu.pipeline_mode<synchronous>, transform_indices = @transform_7, window_bounds = array<i64: 1, 32>}, {transform_indices = @transform_8, window_bounds = array<i64: 32, 32>}]} {
    %c0 = arith.constant 0 : index
    %c0_0 = arith.constant 0 : index
    %0 = vector.load %arg1[%c0, %c0_0] : memref<32x32xf32, #tpu.memory_space<vmem>>, vector<32x32xf32>
    %c0_1 = arith.constant 0 : index
    %c0_2 = arith.constant 0 : index
    %1 = vector.load %arg4[%c0_1, %c0_2] : memref<32x32xf32, #tpu.memory_space<vmem>>, vector<32x32xf32>
    %cst = arith.constant dense<0.000000e+00> : vector<32x32xf32>
    %2 = tpu.matmul %0, %1, %cst {dimension_numbers = #tpu.dot_dimension_numbers<[1], [0], [0], [1], [0, 0, 1, 1], [], []>} : vector<32x32xf32>, vector<32x32xf32>, vector<32x32xf32> -> vector<32x32xf32>
    %c0_3 = arith.constant 0 : index
    %c0_4 = arith.constant 0 : index
    %3 = vector.load %arg2[%c0_3, %c0_4] : memref<32x32xf32, #tpu.memory_space<vmem>>, vector<32x32xf32>
    %c0_5 = arith.constant 0 : index
    %c0_6 = arith.constant 0 : index
    %4 = vector.load %arg5[%c0_5, %c0_6] : memref<32x32xf32, #tpu.memory_space<vmem>>, vector<32x32xf32>
    %cst_7 = arith.constant dense<0.000000e+00> : vector<32x32xf32>
    %5 = tpu.matmul %3, %4, %cst_7 {dimension_numbers = #tpu.dot_dimension_numbers<[1], [0], [0], [1], [0, 0, 1, 1], [], []>} : vector<32x32xf32>, vector<32x32xf32>, vector<32x32xf32> -> vector<32x32xf32>
    %c0_8 = arith.constant 0 : index
    %c0_9 = arith.constant 0 : index
    %6 = vector.load %arg3[%c0_8, %c0_9] : memref<32x32xf32, #tpu.memory_space<vmem>>, vector<32x32xf32>
    %c0_10 = arith.constant 0 : index
    %c0_11 = arith.constant 0 : index
    %7 = vector.load %arg6[%c0_10, %c0_11] : memref<32x32xf32, #tpu.memory_space<vmem>>, vector<32x32xf32>
    %cst_12 = arith.constant dense<0.000000e+00> : vector<32x32xf32>
    %8 = tpu.matmul %6, %7, %cst_12 {dimension_numbers = #tpu.dot_dimension_numbers<[1], [0], [0], [1], [0, 0, 1, 1], [], []>} : vector<32x32xf32>, vector<32x32xf32>, vector<32x32xf32> -> vector<32x32xf32>
    %9 = vector.shape_cast %2 : vector<32x32xf32> to vector<4x8x32xf32>
    %10 = vector.shape_cast %5 : vector<32x32xf32> to vector<4x8x32xf32>
    %11 = vector.shape_cast %8 : vector<32x32xf32> to vector<4x8x32xf32>
    "tpu.trace_start"() <{level = 10 : i32, message = "bqc,bkc->bqk"}> : () -> ()
    %cst_13 = arith.constant dense<0.000000e+00> : vector<4x8x8xf32>
    %12 = tpu.matmul %9, %10, %cst_13 {dimension_numbers = #tpu.dot_dimension_numbers<[2], [2], [1], [1], [0, 0, 0, 1, 1, 1], [0], [0]>} : vector<4x8x32xf32>, vector<4x8x32xf32>, vector<4x8x8xf32> -> vector<4x8x8xf32>
    "tpu.trace_stop"() : () -> ()
    %cst_14 = arith.constant dense<0xFF800000> : vector<4x8xf32>
    %13 = vector.multi_reduction <maximumf>, %12, %cst_14 [2] : vector<4x8x8xf32> to vector<4x8xf32>
    %14 = vector.shape_cast %13 : vector<4x8xf32> to vector<4x8x1xf32>
    %15 = vector.broadcast %14 : vector<4x8x1xf32> to vector<4x8x8xf32>
    %16 = arith.subf %12, %15 : vector<4x8x8xf32>
    %17 = math.exp %16 : vector<4x8x8xf32>
    %cst_15 = arith.constant dense<0.000000e+00> : vector<4x8xf32>
    %18 = vector.multi_reduction <add>, %17, %cst_15 [2] : vector<4x8x8xf32> to vector<4x8xf32>
    %19 = vector.shape_cast %18 : vector<4x8xf32> to vector<4x8x1xf32>
    %20 = tpu.reciprocal %19 {approx = true} : vector<4x8x1xf32> -> vector<4x8x1xf32>
    %21 = vector.broadcast %20 : vector<4x8x1xf32> to vector<4x8x8xf32>
    %22 = arith.mulf %17, %21 : vector<4x8x8xf32>
    "tpu.trace_start"() <{level = 10 : i32, message = "bqk,bkc->bqc"}> : () -> ()
    %cst_16 = arith.constant dense<0.000000e+00> : vector<4x8x32xf32>
    %23 = tpu.matmul %22, %11, %cst_16 {dimension_numbers = #tpu.dot_dimension_numbers<[2], [1], [1], [2], [0, 0, 0, 1, 1, 2], [0], [0]>} : vector<4x8x8xf32>, vector<4x8x32xf32>, vector<4x8x32xf32> -> vector<4x8x32xf32>
    "tpu.trace_stop"() : () -> ()
    %24 = vector.shape_cast %23 : vector<4x8x32xf32> to vector<32x32xf32>
    %c0_17 = arith.constant 0 : index
    %c0_18 = arith.constant 0 : index
    %25 = vector.load %arg7[%c0_17, %c0_18] : memref<32x32xf32, #tpu.memory_space<vmem>>, vector<32x32xf32>
    %cst_19 = arith.constant dense<0.000000e+00> : vector<32x32xf32>
    %26 = tpu.matmul %24, %25, %cst_19 {dimension_numbers = #tpu.dot_dimension_numbers<[1], [0], [0], [1], [0, 0, 1, 1], [], []>} : vector<32x32xf32>, vector<32x32xf32>, vector<32x32xf32> -> vector<32x32xf32>
    %c0_20 = arith.constant 0 : index
    %c0_21 = arith.constant 0 : index
    %27 = vector.load %arg8[%c0_20, %c0_21] : memref<1x32xf32, #tpu.memory_space<vmem>>, vector<1x32xf32>
    %28 = vector.broadcast %27 : vector<1x32xf32> to vector<32x32xf32>
    %29 = arith.addf %26, %28 : vector<32x32xf32>
    %c0_22 = arith.constant 0 : index
    %c0_23 = arith.constant 0 : index
    %30 = vector.load %arg9[%c0_22, %c0_23] : memref<32x32xf32, #tpu.memory_space<vmem>>, vector<32x32xf32>
    tpu.vector_store %arg9[%c0_22, %c0_23], %29 {strides = array<i32>} : memref<32x32xf32, #tpu.memory_space<vmem>>, vector<32x32xf32>,
    return
  }
  func.func @transform_0(%arg0: i32) -> (i32, i32) {
    %c0_i32 = arith.constant 0 : i32
    %c0_i32_0 = arith.constant 0 : i32
    return %arg0, %c0_i32 : i32, i32
  }
  func.func @transform_1(%arg0: i32) -> (i32, i32) {
    %c0_i32 = arith.constant 0 : i32
    %c0_i32_0 = arith.constant 0 : i32
    return %arg0, %c0_i32 : i32, i32
  }
  func.func @transform_2(%arg0: i32) -> (i32, i32) {
    %c0_i32 = arith.constant 0 : i32
    %c0_i32_0 = arith.constant 0 : i32
    return %arg0, %c0_i32 : i32, i32
  }
  func.func @transform_3(%arg0: i32) -> (i32, i32) {
    %c0_i32 = arith.constant 0 : i32
    %c0_i32_0 = arith.constant 0 : i32
    %c0_i32_1 = arith.constant 0 : i32
    return %c0_i32, %c0_i32_0 : i32, i32
  }
  func.func @transform_4(%arg0: i32) -> (i32, i32) {
    %c0_i32 = arith.constant 0 : i32
    %c0_i32_0 = arith.constant 0 : i32
    %c0_i32_1 = arith.constant 0 : i32
    return %c0_i32, %c0_i32_0 : i32, i32
  }
  func.func @transform_5(%arg0: i32) -> (i32, i32) {
    %c0_i32 = arith.constant 0 : i32
    %c0_i32_0 = arith.constant 0 : i32
    %c0_i32_1 = arith.constant 0 : i32
    return %c0_i32, %c0_i32_0 : i32, i32
  }
  func.func @transform_6(%arg0: i32) -> (i32, i32) {
    %c0_i32 = arith.constant 0 : i32
    %c0_i32_0 = arith.constant 0 : i32
    %c0_i32_1 = arith.constant 0 : i32
    return %c0_i32, %c0_i32_0 : i32, i32
  }
  func.func @transform_7(%arg0: i32) -> (i32, i32) {
    %c0_i32 = arith.constant 0 : i32
    %c0_i32_0 = arith.constant 0 : i32
    %c0_i32_1 = arith.constant 0 : i32
    return %c0_i32, %c0_i32_0 : i32, i32
  }
  func.func @transform_8(%arg0: i32) -> (i32, i32) {
    %c0_i32 = arith.constant 0 : i32
    %c0_i32_0 = arith.constant 0 : i32
    return %arg0, %c0_i32 : i32, i32
  }
}

</mosaic_0001>

<bundles_post_ra>
// kernel: tpu_custom_call.1
= control target key start
LH: loop header
LB: loop body
LE: loop exit
PB: predicated region body
PF: predicated region fallthrough
CT: control target
= control target key end

     0   :  { %13 = vsyncpa [#allocation3], 0  ;;  %s1760_s0 = inlined_call_operand.hbm [shape: f32[32,32], index: 0, kind: input, shape index: {}]   ;;  %s1761_s1 = inlined_call_operand.hbm [shape: f32[32,32], index: 1, kind: input, shape index: {}]   ;;  %s1762_s2 = inlined_call_operand.hbm [shape: f32[32,32], index: 2, kind: input, shape index: {}]   ;;  %s1763_s3 = inlined_call_operand.hbm [shape: f32[32,32], index: 3, kind: input, shape index: {}]   ;;  %s1764_s4 = inlined_call_operand.hbm [shape: f32[32,32], index: 4, kind: input, shape index: {}]   ;;  %s1765_s5 = inlined_call_operand.hbm [shape: f32[32,32], index: 5, kind: input, shape index: {}]   ;;  %s1766_s6 = inlined_call_operand.hbm [shape: f32[32,32], index: 6, kind: input, shape index: {}]   ;;  %s1767_s7 = inlined_call_operand.vmem [shape: f32[1,32], index: 7, kind: input, shape index: {}]   ;;  %s1768_s8 = inlined_call_operand.hbm [shape: f32[32,32], index: 8, kind: output, shape index: {}]  }
   0x1   :  { %14 = vsyncpa [#allocation6], 0 }
   0x2   :  { %15 = vsyncpa [#allocation9], 0 }
   0x3   :  { %16 = vsyncpa [#allocation12], 0 }
   0x4   :  { %17 = vsyncpa [#allocation4], 0  ;;  %s1585_s27 = smov [#allocation5]   ;;  %s1586_s29 = smov [#allocation8]  }
   0x5   :  { %s35_s28 = sshll.u32 %s1585_s27, 4  ;;  %s59_s30 = sshll.u32 %s1586_s29, 4  ;;  %s36_s28 = int_to_ptr.vmem [resolvable:$true] %s35_s28  ;;  %s60_s30 = int_to_ptr.vmem [resolvable:$true] %s59_s30 }
   0x6   :  { %s1423_s9 = scalar_lea.vmem %s36_s28, 512  ;;  %p1428_p1 = scmp.lt.s32.totalorder %s36_s28, %s36_s28 }
   0x7   :  { %p1424_p0 = scmp.ne.s32.totalorder %s36_s28, %s1423_s9  ;;  %p1429_p2 = scmp.lt.s32.totalorder %s1423_s9, %s1423_s9 }
   0x9   :  { %p1430_p3 = por %p1429_p2, %p1428_p1 }
   0xb   :  { %p1431_p4 = pnand %p1430_p3, %p1424_p0 }
   0xd   :  { %1434 = shalt.err (!%p1431_p4)
}
   0xe   :  { %s1587_s10 = smov 128   ;;  %s1588_s11 = smov 8  }
   0xf   :  { %41 = dma.hbm_to_vmem [thread:$0]  %s1761_s1, 512, %s36_s28, [#allocation6], %s1587_s10, %s1587_s10, %s1588_s11  }
  0x10   :  { %s1443_s14 = scalar_lea.vmem %s60_s30, 512  ;;  %p1448_p6 = scmp.lt.s32.totalorder %s60_s30, %s60_s30 }
  0x11   :  { %p1444_p5 = scmp.ne.s32.totalorder %s60_s30, %s1443_s14  ;;  %p1449_p7 = scmp.lt.s32.totalorder %s1443_s14, %s1443_s14 }
  0x13   :  { %p1450_p8 = por %p1449_p7, %p1448_p6 }
  0x15   :  { %p1451_p9 = pnand %p1450_p8, %p1444_p5 }
  0x17   :  { %1454 = shalt.err (!%p1451_p9)
}
  0x18   :  { %65 = dma.hbm_to_vmem [thread:$0]  %s1763_s3, 512, %s60_s30, [#allocation9], %s1587_s10, %s1587_s10, %s1588_s11  }
  0x19   :  { %s1589_s17 = smov [#allocation11]   ;;  %s1590_s19 = smov [#allocation2]  }
  0x1a   :  { %s83_s18 = sshll.u32 %s1589_s17, 4  ;;  %s23_s20 = sshll.u32 %s1590_s19, 4  ;;  %s84_s18 = int_to_ptr.vmem [resolvable:$true] %s83_s18  ;;  %s24_s20 = int_to_ptr.vmem [resolvable:$true] %s23_s20 }
  0x1b   :  { %s1463_s1 = scalar_lea.vmem %s84_s18, 512  ;;  %p1468_p11 = scmp.lt.s32.totalorder %s84_s18, %s84_s18 }
  0x1c   :  { %p1464_p10 = scmp.ne.s32.totalorder %s84_s18, %s1463_s1  ;;  %p1469_p12 = scmp.lt.s32.totalorder %s1463_s1, %s1463_s1 }
  0x1e   :  { %p1470_p13 = por %p1469_p12, %p1468_p11 }
  0x20   :  { %p1471_p0 = pnand %p1470_p13, %p1464_p10 }
  0x22   :  { %1474 = shalt.err (!%p1471_p0)
}
  0x23   :  { %89 = dma.hbm_to_vmem [thread:$0]  %s1765_s5, 512, %s84_s18, [#allocation12], %s1587_s10, %s1587_s10, %s1588_s11  }
  0x24   :  { %s1483_s3 = scalar_lea.vmem %s24_s20, 512  ;;  %p1488_p2 = scmp.lt.s32.totalorder %s24_s20, %s24_s20 }
  0x25   :  { %p1484_p1 = scmp.ne.s32.totalorder %s24_s20, %s1483_s3  ;;  %p1489_p3 = scmp.lt.s32.totalorder %s1483_s3, %s1483_s3 }
  0x27   :  { %p1490_p4 = por %p1489_p3, %p1488_p2 }
  0x29   :  { %p1491_p5 = pnand %p1490_p4, %p1484_p1 }
  0x2b   :  { %1494 = shalt.err (!%p1491_p5)
}
  0x2c   :  { %29 = dma.hbm_to_vmem [thread:$0]  %s1760_s0, 512, %s24_s20, [#allocation3], %s1587_s10, %s1587_s10, %s1588_s11  }
  0x2d   :  { %s1591_s25 = smov [#allocation7]   ;;  %s1592_s27 = smov [#allocation10]  }
  0x2e   :  { %s47_s26 = sshll.u32 %s1591_s25, 4  ;;  %s71_s28 = sshll.u32 %s1592_s27, 4  ;;  %s48_s26 = int_to_ptr.vmem [resolvable:$true] %s47_s26  ;;  %s72_s28 = int_to_ptr.vmem [resolvable:$true] %s71_s28 }
  0x2f   :  { %s1503_s5 = scalar_lea.vmem %s48_s26, 512  ;;  %p1508_p7 = scmp.lt.s32.totalorder %s48_s26, %s48_s26 }
  0x30   :  { %p1504_p6 = scmp.ne.s32.totalorder %s48_s26, %s1503_s5  ;;  %p1509_p8 = scmp.lt.s32.totalorder %s1503_s5, %s1503_s5 }
  0x32   :  { %p1510_p9 = por %p1509_p8, %p1508_p7 }
  0x34   :  { %p1511_p10 = pnand %p1510_p9, %p1504_p6 }
  0x36   :  { %1514 = shalt.err (!%p1511_p10)
}
  0x37   :  { %53 = dma.hbm_to_vmem [thread:$0]  %s1762_s2, 512, %s48_s26, [#allocation6], %s1587_s10, %s1587_s10, %s1588_s11  }
  0x38   :  { %s1523_s0 = scalar_lea.vmem %s72_s28, 512  ;;  %p1528_p12 = scmp.lt.s32.totalorder %s72_s28, %s72_s28 }
  0x39   :  { %p1524_p11 = scmp.ne.s32.totalorder %s72_s28, %s1523_s0  ;;  %p1529_p13 = scmp.lt.s32.totalorder %s1523_s0, %s1523_s0 }
  0x3b   :  { %p1530_p0 = por %p1529_p13, %p1528_p12 }
  0x3d   :  { %p1531_p1 = pnand %p1530_p0, %p1524_p11 }
  0x3f   :  { %1534 = shalt.err (!%p1531_p1)
}
  0x40   :  { %77 = dma.hbm_to_vmem [thread:$0]  %s1764_s4, 512, %s72_s28, [#allocation9], %s1587_s10, %s1587_s10, %s1588_s11  }
  0x41   :  { %s1593_s13 = smov [#allocation13]  }
  0x42   :  { %s95_s14 = sshll.u32 %s1593_s13, 4  ;;  %s96_s14 = int_to_ptr.vmem [resolvable:$true] %s95_s14 }
  0x43   :  { %s1543_s15 = scalar_lea.vmem %s96_s14, 512  ;;  %p1548_p3 = scmp.lt.s32.totalorder %s96_s14, %s96_s14 }
  0x44   :  { %p1544_p2 = scmp.ne.s32.totalorder %s96_s14, %s1543_s15  ;;  %p1549_p4 = scmp.lt.s32.totalorder %s1543_s15, %s1543_s15 }
  0x46   :  { %p1550_p5 = por %p1549_p4, %p1548_p3 }
  0x48   :  { %p1551_p6 = pnand %p1550_p5, %p1544_p2 }
  0x4a   :  { %1554 = shalt.err (!%p1551_p6)
}
  0x4b   :  { %101 = dma.hbm_to_vmem [thread:$0]  %s1766_s6, 512, %s96_s14, [#allocation12], %s1587_s10, %s1587_s10, %s1588_s11  }
  0x4c   :  { %1575 = dma.done.wait [#allocation3], 512  }
  0x4d   :  { %1576 = vsyncadd [#allocation3], 4294966784 }
  0x4e   :  { %1577 = dma.done.wait [#allocation6], 1024  }
  0x4f   :  { %1578 = vsyncadd [#allocation6], 4294966272 }
  0x50   :  { %1579 = dma.done.wait [#allocation9], 1024  }
  0x51   :  { %1580 = vsyncadd [#allocation9], 4294966272 }
  0x52   :  { %1581 = dma.done.wait [#allocation12], 1024  }
  0x53   :  { %1582 = vsyncadd [#allocation12], 4294966272  ;;  %vm133_vm0 = vcmask 261120   ;;  %v132_v0 = vld [vmem:[#allocation8 + $0x18] sm:$0xff]  ;;  %v131_v1 = vld [vmem:[#allocation8 + $0x10] sm:$0xff]  ;;  %v1594_v22 = vmov 0.0  }
  0x54   :  { %1291 = vmatprep.subr.mxu1 %v132_v0  ;;  %v125_v2 = vld [vmem:[#allocation2] sm:$0xff]  ;;  %v130_v3 = vld [vmem:[#allocation8 + $0x8] sm:$0xff]  ;;  %v238_v6 = vld [vmem:[#allocation10 + $0x18] sm:$0xff]  ;;  %vm1595_vm1 = vmmov 0   ;;  %vm745_vm2 = vcmask 64512   ;;  %s1596_s17 = smov [#allocation14]  }
  0x55   :  { %1292 = vmatpush3.msra.mxu1 %v132_v0  ;;  %1299 = vmatprep.mubr.msk.f32.mxu1 %vm133_vm0, %v125_v2  ;;  %v129_v4 = vld [vmem:[#allocation8] sm:$0xff]  ;;  %v126_v5 = vld [vmem:[#allocation2 + $0x8] sm:$0xff]  ;;  %v127_v7 = vld [vmem:[#allocation2 + $0x10] sm:$0xff]  ;;  %s1199_s18 = sshll.u32 %s1596_s17, 4  ;;  %s1200_s18 = int_to_ptr.vmem [resolvable:$true] %s1199_s18 }
  0x56   :  { %1293 = vmatprep.subr.mxu1 %v131_v1  ;;  %v237_v8 = vld [vmem:[#allocation10 + $0x10] sm:$0xff]  ;;  %v128_v9 = vld [vmem:[#allocation2 + $0x18] sm:$0xff]  ;;  %v236_v10 = vld [vmem:[#allocation10 + $0x8] sm:$0xff]  ;;  %p1560_p8 = scmp.lt.s32.totalorder %s1200_s18, %s1200_s18 }
  0x57   :  { %1294 = vmatpush3.msra.mxu1 %v131_v1  ;;  %v231_v11 = vld [vmem:[#allocation5] sm:$0xff]  ;;  %v232_v13 = vld [vmem:[#allocation5 + $0x8] sm:$0xff]  ;;  %v233_v14 = vld [vmem:[#allocation5 + $0x10] sm:$0xff] }
  0x58   :  { %1295 = vmatprep.subr.mxu1 %v130_v3  ;;  %v235_v12 = vld [vmem:[#allocation10] sm:$0xff]  ;;  %v234_v15 = vld [vmem:[#allocation5 + $0x18] sm:$0xff]  ;;  %v342_v17 = vld [vmem:[#allocation11 + $0x10] sm:$0xff] }
  0x59   :  { %1296 = vmatpush3.msra.mxu1 %v130_v3  ;;  %v343_v16 = vld [vmem:[#allocation11 + $0x18] sm:$0xff]  ;;  %v341_v18 = vld [vmem:[#allocation11 + $0x8] sm:$0xff]  ;;  %v340_v19 = vld [vmem:[#allocation11] sm:$0xff] }
  0x5a   :  { %1297 = vmatprep.subr.mxu1 %v129_v4  ;;  %1319 = vmatprep.subr.mxu0 %v343_v16  ;;  %v336_v20 = vld [vmem:[#allocation7] sm:$0xff]  ;;  %v337_v21 = vld [vmem:[#allocation7 + $0x8] sm:$0xff]  ;;  %v338_v23 = vld [vmem:[#allocation7 + $0x10] sm:$0xff] }
  0x5b   :  { %1298 = vmatpush3.msra.mxu1 %v129_v4  ;;  %1320 = vmatpush3.msra.mxu0 %v343_v16  ;;  %v339_v24 = vld [vmem:[#allocation7 + $0x18] sm:$0xff]  ;;  %v1084_v16 = vld [vmem:[#allocation13 + $0x10] sm:$0xff] }
  0x5c   :  { %1300 = vmatmul.mubr.msk.f32.vlgmr.msra.gmra.mxu1 %vm133_vm0, %v126_v5  ;;  %1305 = vmatprep.subr.mxu1 %v238_v6 }
  0x5d   :  { %1306 = vmatpush3.msra.mxu1 %v238_v6  ;;  %1302 = vmatprep.mubr.msk.f32.mxu1 %vm133_vm0, %v127_v7 }
  0x5e   :  { %1307 = vmatprep.subr.mxu1 %v237_v8  ;;  %1321 = vmatprep.subr.mxu0 %v342_v17 }
  0x5f   :  { %1308 = vmatpush3.msra.mxu1 %v237_v8  ;;  %1322 = vmatpush3.msra.mxu0 %v342_v17 }
  0x60   :  { %1303 = vmatmul.mubr.msk.f32.gmra.mxu1 %vm133_vm0, %v128_v9  ;;  %1309 = vmatprep.subr.mxu1 %v236_v10 }
  0x61   :  { %1310 = vmatpush3.msra.mxu1 %v236_v10  ;;  %1313 = vmatprep.mubr.msk.f32.mxu1 %vm133_vm0, %v231_v11  ;;  %v1085_v11 = vld [vmem:[#allocation13 + $0x18] sm:$0xff] }
  0x62   :  { %1311 = vmatprep.subr.mxu1 %v235_v12  ;;  %1323 = vmatprep.subr.mxu0 %v341_v18 }
  0x63   :  { %1312 = vmatpush3.msra.mxu1 %v235_v12  ;;  %1324 = vmatpush3.msra.mxu0 %v341_v18 }
  0x64   :  { %1314 = vmatmul.mubr.msk.f32.vlgmr.msra.gmra.mxu1 %vm133_vm0, %v232_v13  ;;  %1325 = vmatprep.subr.mxu0 %v340_v19 }
  0x65   :  { %1316 = vmatprep.mubr.msk.f32.mxu1 %vm133_vm0, %v233_v14  ;;  %1326 = vmatpush3.msra.mxu0 %v340_v19  ;;  %v1083_v19 = vld [vmem:[#allocation13 + $0x8] sm:$0xff] }
  0x66   :  { %1327 = vmatprep.mubr.msk.f32.mxu0 %vm133_vm0, %v336_v20  ;;  %1333 = vmatprep.subr.mxu1 %v1594_v22  ;;  %v1082_v20 = vld [vmem:[#allocation13] sm:$0xff] }
  0x67   :  { %1328 = vmatmul.mubr.msk.f32.vlgmr.msra.gmra.mxu0 %vm133_vm0, %v337_v21  ;;  %1343 = vmatprep.subr.mxu0 %v1594_v22 }
  0x68   :  { %1317 = vmatmul.mubr.msk.f32.gmra.mxu1 %vm133_vm0, %v234_v15  ;;  %1330 = vmatprep.mubr.msk.f32.mxu0 %vm133_vm0, %v338_v23 }
  0x69   :  { %1335 = vmatprep.mubr.msk.f32.mxu1 %vm1595_vm1, %v1594_v22 }
  0x6b   :  { %1331 = vmatmul.mubr.msk.f32.gmra.mxu0 %vm133_vm0, %v339_v24 }
  0x6c   :  { %1345 = vmatprep.mubr.msk.f32.mxu0 %vm1595_vm1, %v1594_v22 }
 0x11c   :  { %v1301_v25 = vpop.f32.mrf.mxu1 }
 0x11e   :  { %v212_v26 = vpop.f32.mrf.mxu1 }
 0x120   :  { %v1304_v27 = vpop.f32.mrf.mxu1 }
 0x122   :  { %v222_v28 = vpop.f32.mrf.mxu1 }
 0x124   :  { %v1315_v29 = vpop.f32.mrf.mxu1 }
 0x126   :  { %v317_v30 = vpop.f32.mrf.mxu1 }
 0x127   :  { %1334 = vmatpush3.xpose.msk.msra.mxu1 %vm133_vm0, %v317_v30  ;;  %v1329_v33 = vpop.f32.mrf.mxu0 }
 0x128   :  { %v1318_v31 = vpop.f32.mrf.mxu1  ;;  %1338 = vmatprep.subr.mxu1 %v1594_v22 }
 0x129   :  { %v422_v34 = vpop.f32.mrf.mxu0 }
 0x12a   :  { %v327_v32 = vpop.f32.mrf.mxu1  ;;  %1336 = vmatmul.mubr.msk.f32.vlgmr.msra.gmra.mxu1 %vm133_vm0, %v212_v26 }
 0x12b   :  { %1339 = vmatpush3.xpose.msk.msra.mxu1 %vm133_vm0, %v1315_v29  ;;  %1344 = vmatpush3.xpose.msk.msra.mxu0 %vm133_vm0, %v327_v32  ;;  %v1724_v35 = vpop.f32.mrf.mxu0  ;;  %v1238_v29 = vld [vmem:[%s1767_s7] ss:$0 sm:$0xff]  ;;  %s1555_s7 = scalar_lea.vmem %s1200_s18, 512 }
 0x12c   :  { %1340 = vmatprep.mubr.msk.f32.mxu1 %vm1595_vm1, %v1594_v22  ;;  %1348 = vmatprep.subr.mxu1 %v1594_v22  ;;  %p1556_p7 = scmp.ne.s32.totalorder %s1200_s18, %s1555_s7  ;;  %p1561_p9 = scmp.lt.s32.totalorder %s1555_s7, %s1555_s7 }
 0x12d   :  { %1353 = vmatprep.subr.mxu0 %v1594_v22  ;;  %v432_v38 = vpop.f32.mrf.mxu0 }
 0x12e   :  { %1341 = vmatmul.mubr.msk.f32.vlgmr.msra.gmra.mxu1 %vm133_vm0, %v1301_v25  ;;  %1346 = vmatmul.mubr.msk.f32.vlgmr.msra.gmra.mxu0 %vm133_vm0, %v222_v28  ;;  %p1562_p10 = por %p1561_p9, %p1560_p8 }
 0x12f   :  { %1349 = vmatpush3.xpose.msk.msra.mxu1 %vm133_vm0, %v1318_v31  ;;  %1350 = vmatprep.mubr.msk.f32.mxu1 %vm1595_vm1, %v1594_v22 }
 0x130   :  { %1358 = vmatprep.subr.mxu1 %v1594_v22  ;;  %1355 = vmatprep.mubr.msk.f32.mxu0 %vm1595_vm1, %v1594_v22  ;;  %p1563_p11 = pnand %p1562_p10, %p1556_p7 }
 0x131   :  { %1354 = vmatpush3.msra.mxu0 %v422_v34 }
 0x132   :  { %1351 = vmatmul.mubr.msk.f32.vlgmr.msra.gmra.mxu1 %vm133_vm0, %v1304_v27  ;;  %1363 = vmatprep.subr.mxu0 %v1594_v22 }
 0x133   :  { %1360 = vmatprep.mubr.msk.f32.mxu1 %vm1595_vm1, %v1594_v22  ;;  %1359 = vmatpush3.msra.mxu1 %v1329_v33 }
 0x134   :  { %1368 = vmatprep.subr.mxu1 %v1594_v22 }
 0x1ea   :  { %v513_v36 = vpop.f32.mrf.mxu1 }
 0x1eb   :  { %v746_v37 = vsel %vm745_vm2, %v513_v36, -inf }
 0x1ec   :  { %747 = vmax.xlane.f32.xlu0 %v746_v37  ;;  %v1337_v39 = vpop.f32.mrf.mxu1 }
 0x1ee   :  { %v589_v40 = vpop.f32.mrf.mxu1  ;;  %v665_v41 = vpop.f32.mrf.mxu0 }
 0x1ef   :  { %v752_v42 = vsel %vm745_vm2, %v665_v41, -inf  ;;  %v749_v43 = vsel %vm745_vm2, %v589_v40, -inf }
 0x1f0   :  { %753 = vmax.xlane.f32.xlu1 %v752_v42  ;;  %v1347_v44 = vpop.f32.mrf.mxu0  ;;  %750 = vmax.xlane.f32.xlu0 %v749_v43  ;;  %v1342_v45 = vpop.f32.mrf.mxu1 }
 0x1f2   :  { %v741_v46 = vpop.f32.mrf.mxu1 }
 0x1f3   :  { %v755_v47 = vsel %vm745_vm2, %v741_v46, -inf }
 0x1f4   :  { %756 = vmax.xlane.f32.xlu1 %v755_v47  ;;  %v1352_v48 = vpop.f32.mrf.mxu1 }
 0x275   :  { %v748_v49 = vpop.xlane.xlu0 %747 }
 0x276   :  { %v758_v50 = vsub.f32 %v513_v36, %v748_v49 }
 0x278   :  { %v762_v51 = vmul.f32 1.442695, %v758_v50 }
 0x279   :  { %v754_v52 = vpop.xlane.xlu1 %753  ;;  %v751_v53 = vpop.xlane.xlu0 %750 }
 0x27a   :  { %1399 = vpow2.f32 %v762_v51  ;;  %v760_v54 = vsub.f32 %v665_v41, %v754_v52  ;;  %v759_v55 = vsub.f32 %v589_v40, %v751_v53 }
 0x27c   :  { %v766_v56 = vmul.f32 1.442695, %v760_v54  ;;  %v764_v57 = vmul.f32 1.442695, %v759_v55 }
 0x27d   :  { %v757_v58 = vpop.xlane.xlu1 %756 }
 0x27e   :  { %1401 = vpow2.f32 %v766_v56  ;;  %v761_v59 = vsub.f32 %v741_v46, %v757_v58 }
 0x27f   :  { %1403 = vpow2.f32 %v764_v57 }
 0x280   :  { %v768_v60 = vmul.f32 1.442695, %v761_v59 }
 0x282   :  { %1405 = vpow2.f32 %v768_v60 }
 0x287   :  { %v1400_v61 = vpop.eup %1399 }
 0x288   :  { %v770_v62 = vsel %vm745_vm2, %v1400_v61, 0.0 }
 0x289   :  { %771 = vadd.xlane.f32.xlu0 %v770_v62 }
 0x28b   :  { %v1402_v63 = vpop.eup %1401 }
 0x28c   :  { %v1404_v0 = vpop.eup %1403  ;;  %v776_v1 = vsel %vm745_vm2, %v1402_v63, 0.0 }
 0x28d   :  { %777 = vadd.xlane.f32.xlu0 %v776_v1  ;;  %v773_v2 = vsel %vm745_vm2, %v1404_v0, 0.0 }
 0x28e   :  { %774 = vadd.xlane.f32.xlu1 %v773_v2 }
 0x28f   :  { %v1406_v3 = vpop.eup %1405 }
 0x290   :  { %v779_v4 = vsel %vm745_vm2, %v1406_v3, 0.0 }
 0x292   :  { %780 = vadd.xlane.f32.xlu1 %v779_v4 }
 0x312   :  { %v772_v5 = vpop.xlane.xlu0 %771 }
 0x313   :  { %1407 = vrcp.f32 %v772_v5 }
 0x316   :  { %v778_v6 = vpop.xlane.xlu0 %777 }
 0x317   :  { %1409 = vrcp.f32 %v778_v6  ;;  %v775_v7 = vpop.xlane.xlu1 %774 }
 0x318   :  { %1411 = vrcp.f32 %v775_v7 }
 0x31b   :  { %v781_v8 = vpop.xlane.xlu1 %780 }
 0x31c   :  { %1413 = vrcp.f32 %v781_v8 }
 0x320   :  { %v1408_v9 = vpop.eup %1407 }
 0x321   :  { %v786_v10 = vmul.f32 %v1408_v9, %v1400_v61 }
 0x323   :  { %1356 = vmatmul.mubr.msk.f32.vlgmr.msra.gmra.mxu0 %vm745_vm2, %v786_v10 }
 0x324   :  { %v1410_v12 = vpop.eup %1409  ;;  %1364 = vmatpush3.msra.mxu0 %v432_v38  ;;  %1365 = vmatprep.mubr.msk.f32.mxu0 %vm1595_vm1, %v1594_v22 }
 0x325   :  { %v1412_v13 = vpop.eup %1411  ;;  %v788_v14 = vmul.f32 %v1410_v12, %v1402_v63  ;;  %1373 = vmatprep.subr.mxu0 %v1085_v11 }
 0x326   :  { %v787_v15 = vmul.f32 %v1412_v13, %v1404_v0 }
 0x327   :  { %1366 = vmatmul.mubr.msk.f32.vlgmr.msra.gmra.mxu0 %vm745_vm2, %v788_v14 }
 0x328   :  { %1361 = vmatmul.mubr.msk.f32.vlgmr.msra.gmra.mxu1 %vm745_vm2, %v787_v15  ;;  %1374 = vmatpush3.msra.mxu0 %v1085_v11 }
 0x329   :  { %v1414_v17 = vpop.eup %1413  ;;  %1369 = vmatpush3.msra.mxu1 %v1724_v35  ;;  %1370 = vmatprep.mubr.msk.f32.mxu1 %vm1595_vm1, %v1594_v22 }
 0x32a   :  { %v789_v18 = vmul.f32 %v1414_v17, %v1406_v3  ;;  %1375 = vmatprep.subr.mxu0 %v1084_v16 }
 0x32b   :  { %1376 = vmatpush3.msra.mxu0 %v1084_v16 }
 0x32c   :  { %1371 = vmatmul.mubr.msk.f32.vlgmr.msra.gmra.mxu1 %vm745_vm2, %v789_v18  ;;  %1377 = vmatprep.subr.mxu0 %v1083_v19 }
 0x32d   :  { %1378 = vmatpush3.msra.mxu0 %v1083_v19 }
 0x32e   :  { %1379 = vmatprep.subr.mxu0 %v1082_v20 }
 0x32f   :  { %1380 = vmatpush3.msra.mxu0 %v1082_v20 }
 0x3e3   :  { %v859_v21 = vpop.f32.mrf.mxu0 }
 0x3e4   :  { %1381 = vmatprep.mubr.msk.f32.mxu0 %vm133_vm0, %v859_v21 }
 0x3e5   :  { %v1357_v23 = vpop.f32.mrf.mxu0 }
 0x3e7   :  { %v1005_v24 = vpop.f32.mrf.mxu0 }
 0x3e8   :  { %v932_v25 = vpop.f32.mrf.mxu1 }
 0x3e9   :  { %1382 = vmatmul.mubr.msk.f32.vlgmr.msra.gmra.mxu0 %vm133_vm0, %v932_v25  ;;  %v1367_v22 = vpop.f32.mrf.mxu0 }
 0x3ea   :  { %v1362_v26 = vpop.f32.mrf.mxu1  ;;  %1384 = vmatprep.mubr.msk.f32.mxu0 %vm133_vm0, %v1005_v24 }
 0x3ec   :  { %v1078_v27 = vpop.f32.mrf.mxu1 }
 0x3ed   :  { %1385 = vmatmul.mubr.msk.f32.gmra.mxu0 %vm133_vm0, %v1078_v27 }
 0x3ee   :  { %v1372_v28 = vpop.f32.mrf.mxu1 }
 0x4a9   :  { %v1383_v30 = vpop.f32.mrf.mxu0 }
 0x4aa   :  { %v1177_v31 = vadd.f32 %v1383_v30, %v1238_v29 }
 0x4ab   :  { %v1171_v32 = vpop.f32.mrf.mxu0 }
 0x4ac   :  { %1191 = vst.msk [vmem:[#allocation14 + $0x8] sm:$0xff] %vm133_vm0, %v1177_v31  ;;  %v1172_v33 = vadd.f32 %v1238_v29, %v1171_v32 }
 0x4ad   :  { %v1386_v34 = vpop.f32.mrf.mxu0 }
 0x4ae   :  { %1190 = vst.msk [vmem:[#allocation14] sm:$0xff] %vm133_vm0, %v1172_v33  ;;  %v1187_v35 = vadd.f32 %v1386_v34, %v1238_v29 }
 0x4af   :  { %v1181_v36 = vpop.f32.mrf.mxu0 }
 0x4b0   :  { %1193 = vst.msk [vmem:[#allocation14 + $0x18] sm:$0xff] %vm133_vm0, %v1187_v35  ;;  %v1182_v37 = vadd.f32 %v1238_v29, %v1181_v36 }
 0x4b2   :  { %1192 = vst.msk [vmem:[#allocation14 + $0x10] sm:$0xff] %vm133_vm0, %v1182_v37 }
 0x4b3   :  { %1566 = shalt.err (!%p1563_p11)
}
 0x4b4   :  { %1205 = dma.vmem_to_hbm [thread:$0]  %s1200_s18, 512, %s1768_s8, [#allocation4], %s1587_s10, %s1587_s10, %s1588_s11  }
 0x4b5   :  { %1583 = dma.done.wait [#allocation4], 512  }
 0x4b6   :  { %1584 = vsyncadd [#allocation4], 4294966784 }
 0x4b7   :  { %1209 = vsyncpa [#allocation3], 1 }
 0x4b8   :  { %1210 = vsyncpa [#allocation6], 1 }
 0x4b9   :  { %1211 = vsyncpa [#allocation9], 1 }
 0x4ba   :  { %1212 = vsyncpa [#allocation12], 1 }
 0x4bb   :  { %1213 = vsyncpa [#allocation4], 1 }

</bundles_post_ra>
